<compile_context>
chip_gen: v6e
topology: v6e:2x2x1
jax: 0.10.0
libtpu: 0.0.40
codegen_flags: <defaults>
</compile_context>

<pallas_src>
import functools

import jax
import jax.numpy as jnp
from jax.experimental import pallas as pl
from jax.experimental.pallas import tpu as pltpu

GAMMA = 2.0
ALPHA = 0.25
LANES = 128
SUBLANES = 8
DEFAULT_BLOCK_ROWS = 512     # (512, 128) f32 block = 256 KiB
NUM_CORES = 2                # leading "parallel" grid axis (2 TCs on v7x)

# Padding values whose focal-loss contribution is *exactly* 0 in f32:
#   x = +40, t = 1  ->  sigmoid(x) rounds to 1.0, so (1 - pt) == 0.0 exactly.
_PAD_X = 40.0
_PAD_T = 1


def _focal_loss_kernel(x_ref, t_ref, o_ref, *, gamma, alpha):
    i = pl.program_id(1)

    @pl.when(i == 0)
    def _():
        o_ref[...] = jnp.zeros_like(o_ref)

    x = x_ref[...]                              # (block_rows, 128) f32
    tf = t_ref[...].astype(jnp.float32)         # int8 0/1 -> f32
    t_pos = tf > 0.5

    # Numerically-stable BCE-with-logits (reduction='none'), matches PyTorch:
    #   max(x, 0) - x*t + log1p(exp(-|x|))
    e = jnp.exp(-jnp.abs(x))
    bce = jnp.maximum(x, 0.0) - x * tf + jnp.log1p(e)

    # pt = exp(-bce) == sigmoid(x) if t==1 else 1 - sigmoid(x); reuse e = exp(-|x|)
    # (mathematically exact for 0/1 targets; saves one EUP exp per element).
    p = jnp.where(x >= 0.0, 1.0, e) / (1.0 + e)          # sigmoid(x)
    pt = jnp.where(t_pos, p, 1.0 - p)

    # at = alpha_table.gather(0, targets.long()), alpha_table = [1 - a, a]
    at = jnp.where(t_pos, alpha, 1.0 - alpha)

    one_m_pt = 1.0 - pt
    if gamma == 2.0:                 # gamma is a Python closure constant
        focal = one_m_pt * one_m_pt  # avoid pow -> exp(gamma*log(.)) on the EUP
    else:
        focal = one_m_pt ** gamma
    f_loss = at * focal * bce                            # (block_rows, 128)

    # Fold to a vreg-shaped (8, 128) partial sum with a log-depth tree of
    # vector adds (slices land on 8-row vreg boundaries -> pure VPU, no XLU),
    # then accumulate into the resident output block.
    part = f_loss
    r = part.shape[0]
    while r > SUBLANES:
        r //= 2
        part = part[:r, :] + part[r:, :]
    o_ref[0] += part


def focal_loss(inputs, targets, *, gamma=GAMMA, alpha=ALPHA,
               block_rows=DEFAULT_BLOCK_ROWS):
    """inputs: 1-D logits, targets: 1-D 0/1 labels. Returns scalar f32 mean loss."""
    assert inputs.shape == targets.shape
    assert block_rows >= 32 and (block_rows & (block_rows - 1)) == 0
    n = inputs.shape[0]

    # Row / tile geometry: pad so the grid is exactly (NUM_CORES, tiles_per_core).
    rows_needed = pl.cdiv(n, LANES)
    # Shrink the block for small inputs; keep it a power of two and >= 32 rows
    # (int8 targets pack (32, 128) per vreg).
    block_rows = min(block_rows,
                     max(32, pl.next_power_of_2(pl.cdiv(rows_needed, NUM_CORES))))
    tiles_per_core = pl.cdiv(rows_needed, block_rows * NUM_CORES)
    total_rows = NUM_CORES * tiles_per_core * block_rows
    n_pad = total_rows * LANES

    x_flat = jnp.full((n_pad,), _PAD_X, jnp.float32)
    x_flat = x_flat.at[:n].set(inputs.astype(jnp.float32))
    t_flat = jnp.full((n_pad,), _PAD_T, jnp.int8)
    t_flat = t_flat.at[:n].set(targets.astype(jnp.int8))

    x2 = x_flat.reshape(total_rows, LANES)
    t2 = t_flat.reshape(total_rows, LANES)

    kernel = functools.partial(_focal_loss_kernel, gamma=gamma, alpha=alpha)
    row_block = lambda c, i: (c * tiles_per_core + i, 0)

    partials = pl.pallas_call(
        kernel,
        out_shape=jax.ShapeDtypeStruct((NUM_CORES, SUBLANES, LANES), jnp.float32),
        grid_spec=pltpu.PrefetchScalarGridSpec(
            num_scalar_prefetch=0,
            grid=(NUM_CORES, tiles_per_core),
            in_specs=[
                pl.BlockSpec((block_rows, LANES), row_block),   # logits (f32)
                pl.BlockSpec((block_rows, LANES), row_block),   # targets (int8)
            ],
            out_specs=pl.BlockSpec((1, SUBLANES, LANES), lambda c, i: (c, 0, 0)),
        ),
        compiler_params=pltpu.CompilerParams(
            dimension_semantics=("parallel", "arbitrary"),
        ),
    )(x2, t2)

    # Final cross-core / cross-lane reduce + mean over the *true* element count.
    return jnp.sum(partials) / n


def _focal_loss_ref(inputs, targets, *, gamma=GAMMA, alpha=ALPHA):
    x = inputs.astype(jnp.float32)
    t = targets.astype(jnp.float32)
    bce = jnp.maximum(x, 0.0) - x * t + jnp.log1p(jnp.exp(-jnp.abs(x)))
    at = jnp.where(t > 0.5, alpha, 1.0 - alpha)
    pt = jnp.exp(-bce)
    return jnp.mean(at * (1.0 - pt) ** gamma * bce)


if __name__ == "__main__":
    key = jax.random.PRNGKey(0)
    k_x, k_t = jax.random.split(key)

    N = 2048
    inputs = jax.random.normal(k_x, (N,), dtype=jnp.float32)
    targets = jax.random.bernoulli(k_t, p=0.3, shape=(N,)).astype(jnp.float32)

    loss = jax.block_until_ready(focal_loss(inputs, targets))
    ref = _focal_loss_ref(inputs, targets)
    assert jnp.allclose(loss, ref, rtol=1e-5, atol=1e-5), (loss, ref)

    # Second check: odd size (exercises padding + both grid cells / cores).
    k_x2, k_t2 = jax.random.split(jax.random.PRNGKey(1))
    N2 = 40000
    inputs2 = jax.random.normal(k_x2, (N2,), dtype=jnp.float32)
    targets2 = jax.random.bernoulli(k_t2, p=0.5, shape=(N2,)).astype(jnp.float32)
    loss2 = jax.block_until_ready(focal_loss(inputs2, targets2))
    ref2 = _focal_loss_ref(inputs2, targets2)
    assert jnp.allclose(loss2, ref2, rtol=1e-5, atol=1e-5), (loss2, ref2)

    print("KERNEL_OK")
</pallas_src>

<mosaic_0001>
module attributes {stable_mosaic.version = 11 : i64} {
  func.func @_focal_loss_kernel(%arg0: i32, %arg1: i32, %arg2: memref<32x128xf32, #tpu.memory_space<vmem>>, %arg3: memref<32x128xi8, #tpu.memory_space<vmem>>, %arg4: memref<1x8x128xf32, #tpu.memory_space<vmem>>) attributes {dimension_semantics = [#tpu.dimension_semantics<parallel>, #tpu.dimension_semantics<arbitrary>], iteration_bounds = array<i64: 2, 1>, scalar_prefetch = 0 : i64, scratch_operands = 0 : i64, tpu.core_type = #tpu.core_type<tc>, window_params = [{transform_indices = @transform_0, window_bounds = array<i64: 32, 128>}, {transform_indices = @transform_1, window_bounds = array<i64: 32, 128>}, {transform_indices = @transform_2, window_bounds = array<i64: 1, 8, 128>}]} {
    %c0_i32 = arith.constant 0 : i32
    %0 = arith.cmpi eq, %arg1, %c0_i32 : i32
    %1 = arith.extui %0 : i1 to i32
    %c0_i32_0 = arith.constant 0 : i32
    %2 = arith.cmpi ne, %1, %c0_i32_0 : i32
    scf.if %2 {
      %cst_19 = arith.constant 0.000000e+00 : f32
      %48 = vector.broadcast %cst_19 : f32 to vector<1x8x128xf32>
      %c0_20 = arith.constant 0 : index
      %c0_21 = arith.constant 0 : index
      %c0_22 = arith.constant 0 : index
      %49 = vector.load %arg4[%c0_20, %c0_21, %c0_22] : memref<1x8x128xf32, #tpu.memory_space<vmem>>, vector<1x8x128xf32>
      tpu.vector_store %arg4[%c0_20, %c0_21, %c0_22], %48 {strides = array<i32>} : memref<1x8x128xf32, #tpu.memory_space<vmem>>, vector<1x8x128xf32>,
    } else {
    }
    %c0 = arith.constant 0 : index
    %c0_1 = arith.constant 0 : index
    %3 = vector.load %arg2[%c0, %c0_1] : memref<32x128xf32, #tpu.memory_space<vmem>>, vector<32x128xf32>
    %c0_2 = arith.constant 0 : index
    %c0_3 = arith.constant 0 : index
    %4 = vector.load %arg3[%c0_2, %c0_3] : memref<32x128xi8, #tpu.memory_space<vmem>>, vector<32x128xi8>
    %5 = arith.sitofp %4 : vector<32x128xi8> to vector<32x128xf32>
    %cst = arith.constant 5.000000e-01 : f32
    %6 = vector.broadcast %cst : f32 to vector<32x128xf32>
    %7 = arith.cmpf ogt, %5, %6 : vector<32x128xf32>
    %8 = math.absf %3 : vector<32x128xf32>
    %cst_4 = arith.constant 0.000000e+00 : f32
    %9 = vector.broadcast %cst_4 : f32 to vector<32x128xf32>
    %10 = arith.subf %9, %8 : vector<32x128xf32>
    %11 = math.exp %10 : vector<32x128xf32>
    %cst_5 = arith.constant 0.000000e+00 : f32
    %12 = vector.broadcast %cst_5 : f32 to vector<32x128xf32>
    %13 = arith.maximumf %3, %12 : vector<32x128xf32>
    %14 = arith.mulf %3, %5 : vector<32x128xf32>
    %15 = arith.subf %13, %14 : vector<32x128xf32>
    %16 = math.log1p %11 : vector<32x128xf32>
    %17 = arith.addf %15, %16 : vector<32x128xf32>
    %cst_6 = arith.constant 0.000000e+00 : f32
    %18 = vector.broadcast %cst_6 : f32 to vector<32x128xf32>
    %19 = arith.cmpf oge, %3, %18 : vector<32x128xf32>
    %cst_7 = arith.constant 1.000000e+00 : f32
    %20 = vector.broadcast %cst_7 : f32 to vector<32x128xf32>
    %21 = arith.select %19, %20, %11 : vector<32x128xi1>, vector<32x128xf32>
    %cst_8 = arith.constant 1.000000e+00 : f32
    %22 = vector.broadcast %cst_8 : f32 to vector<32x128xf32>
    %23 = arith.addf %22, %11 : vector<32x128xf32>
    %24 = arith.divf %21, %23 : vector<32x128xf32>
    %cst_9 = arith.constant 1.000000e+00 : f32
    %25 = vector.broadcast %cst_9 : f32 to vector<32x128xf32>
    %26 = arith.subf %25, %24 : vector<32x128xf32>
    %27 = arith.select %7, %24, %26 : vector<32x128xi1>, vector<32x128xf32>
    %cst_10 = arith.constant 2.500000e-01 : f32
    %cst_11 = arith.constant 7.500000e-01 : f32
    %28 = vector.broadcast %cst_10 : f32 to vector<32x128xf32>
    %29 = vector.broadcast %cst_11 : f32 to vector<32x128xf32>
    %30 = arith.select %7, %28, %29 : vector<32x128xi1>, vector<32x128xf32>
    %cst_12 = arith.constant 1.000000e+00 : f32
    %31 = vector.broadcast %cst_12 : f32 to vector<32x128xf32>
    %32 = arith.subf %31, %27 : vector<32x128xf32>
    %33 = arith.mulf %32, %32 : vector<32x128xf32>
    %34 = arith.mulf %30, %33 : vector<32x128xf32>
    %35 = arith.mulf %34, %17 : vector<32x128xf32>
    %36 = vector.extract_strided_slice %35 {offsets = [0, 0], sizes = [16, 128], strides = [1, 1]} : vector<32x128xf32> to vector<16x128xf32>
    %37 = vector.extract_strided_slice %35 {offsets = [16, 0], sizes = [16, 128], strides = [1, 1]} : vector<32x128xf32> to vector<16x128xf32>
    %38 = arith.addf %36, %37 : vector<16x128xf32>
    %39 = vector.extract_strided_slice %38 {offsets = [0, 0], sizes = [8, 128], strides = [1, 1]} : vector<16x128xf32> to vector<8x128xf32>
    %40 = vector.extract_strided_slice %38 {offsets = [8, 0], sizes = [8, 128], strides = [1, 1]} : vector<16x128xf32> to vector<8x128xf32>
    %41 = arith.addf %39, %40 : vector<8x128xf32>
    %c0_13 = arith.constant 0 : index
    %c0_14 = arith.constant 0 : index
    %c0_15 = arith.constant 0 : index
    %42 = vector.load %arg4[%c0_13, %c0_14, %c0_15] : memref<1x8x128xf32, #tpu.memory_space<vmem>>, vector<1x8x128xf32>
    %43 = vector.shape_cast %42 : vector<1x8x128xf32> to vector<8x128xf32>
    %44 = arith.addf %43, %41 : vector<8x128xf32>
    %c0_16 = arith.constant 0 : index
    %c0_17 = arith.constant 0 : index
    %c0_18 = arith.constant 0 : index
    %45 = vector.load %arg4[%c0_16, %c0_17, %c0_18] : memref<1x8x128xf32, #tpu.memory_space<vmem>>, vector<1x8x128xf32>
    %46 = vector.shape_cast %45 : vector<1x8x128xf32> to vector<8x128xf32>
    %47 = vector.shape_cast %44 : vector<8x128xf32> to vector<1x8x128xf32>
    tpu.vector_store %arg4[%c0_16, %c0_17, %c0_18], %47 {strides = array<i32>} : memref<1x8x128xf32, #tpu.memory_space<vmem>>, vector<1x8x128xf32>,
    return
  }
  func.func @transform_0(%arg0: i32, %arg1: i32) -> (i32, i32) {
    %c1_i32 = arith.constant 1 : i32
    %0 = arith.muli %arg0, %c1_i32 : i32
    %1 = arith.addi %0, %arg1 : i32
    %c0_i32 = arith.constant 0 : i32
    %c0_i32_0 = arith.constant 0 : i32
    return %1, %c0_i32 : i32, i32
  }
  func.func @transform_1(%arg0: i32, %arg1: i32) -> (i32, i32) {
    %c1_i32 = arith.constant 1 : i32
    %0 = arith.muli %arg0, %c1_i32 : i32
    %1 = arith.addi %0, %arg1 : i32
    %c0_i32 = arith.constant 0 : i32
    %c0_i32_0 = arith.constant 0 : i32
    return %1, %c0_i32 : i32, i32
  }
  func.func @transform_2(%arg0: i32, %arg1: i32) -> (i32, i32, i32) {
    %c0_i32 = arith.constant 0 : i32
    %c0_i32_0 = arith.constant 0 : i32
    %c0_i32_1 = arith.constant 0 : i32
    return %arg0, %c0_i32, %c0_i32_0 : i32, i32, i32
  }
}

</mosaic_0001>

<bundles_post_ra>
// kernel: tpu_custom_call.1
= control target key start
LH: loop header
LB: loop body
LE: loop exit
PB: predicated region body
PF: predicated region fallthrough
CT: control target
= control target key end

     0   :  { %7 = vsyncpa [#allocation3], 0  ;;  %s1039_s0 = inlined_call_operand.hbm [shape: f32[64,128], index: 0, kind: input, shape index: {}]   ;;  %s1040_s1 = inlined_call_operand.hbm [shape: s8[64,128], index: 1, kind: input, shape index: {}]   ;;  %s1041_s2 = inlined_call_operand.hbm [shape: f32[2,8,128], index: 2, kind: output, shape index: {}]  }
   0x1   :  { %9 = vsyncpa [#allocation3 + $0x1], 0 }
   0x2   :  { %10 = vsyncpa [#allocation6], 0 }
   0x3   :  { %12 = vsyncpa [#allocation6 + $0x1], 0 }
   0x4   :  { %13 = vsyncpa [#allocation4], 0 }
   0x5   :  { %15 = vsyncpa [#allocation4 + $0x1], 0  ;;  %s757_s9 = smov 0   ;;  %s759_s10 = smov 0  }
   0x6   :  { %s761_s11 = smov 0   ;;  %s763_s12 = smov 0  }
   0x7   :  { %s765_s13 = smov 0   ;;  %s767_s14 = smov 0  }
   0x8 LB: > { %s481_s15 = sadd.s32 4294967295, %s734_s14   ;;  %s482_s16 = sadd.s32 4294967294, %s734_s14   ;;  %s734_s14 = sphi %s767_s14, %s21_s14   ;;  %s730_s13 = sphi %s765_s13, %s1061_s13   ;;  %s726_s12 = sphi %s763_s12, %s1060_s12   ;;  %s722_s11 = sphi %s761_s11, %s1059_s11   ;;  %s718_s10 = sphi %s759_s10, %s1058_s10   ;;  %s714_s9 = sphi %s757_s9, %s1057_s9  }
   0x9   : > { %s33_s17 = sadd.s32 1, %s730_s13  ;;  %s42_s18 = sadd.s32 1, %s722_s11 }
   0xa   : > { %p35_p0 = scmp.ge.s32.totalorder %s33_s17, 2  ;;  %p49_p1 = scmp.ne.s32.totalorder %s722_s11, %s718_s10 }
   0xb   : > { %p50_p2 = scmp.eq.s32.totalorder %s734_s14, 0  ;;  %p55_p3 = scmp.ne.s32.totalorder %s718_s10, %s714_s9 }
   0xc   : > { %s1063_s17 = smov (%p35_p0, %s33_s17), 0  ;;  %p56_p5 = scmp.eq.s32.totalorder %s481_s15, 0 }
   0xd   : > { %p798_p4 = por %p50_p2, %p49_p1  ;;  %s39_s20 = ssub.s32 %s730_s13, %s1063_s17 }
   0xe   : > { %p107_p6 = scmp.eq.s32.totalorder %s481_s15, 1  ;;  %p40_p7 = scmp.eq.s32.totalorder %s39_s20, 0 }
   0xf   : > { %p804_p8 = por %p56_p5, %p55_p3  ;;  %p113_p10 = scmp.eq.s32.totalorder %s482_s16, 1 }
  0x10   : > { %p808_p9 = por %p107_p6, %p49_p1  ;;  %p516_p13 = scmp.lt.s32.totalorder %s734_s14, 2 }
  0x11   : > { %s813_s23 = scalar_select %p40_p7, %s722_s11, %s42_s18  }
  0x12   : > { %p815_p11 = por %p113_p10, %p55_p3  ;;  %s822_s25 = sand.u32 1, %s722_s11  }
  0x13   : > { %s485_s26 = sshll.u32 %s822_s25, 5  ;;  %s498_s27 = sshll.u32 %s730_s13, 9 }
  0x14   : > { %s144_s30 = scalar_lea.hbm %s1039_s0, %s498_s27  ;;  %s137_s3 = scalar_lea.vmem [#allocation2], %s485_s26 }
  0x15   : > { %s145_s4 = sshll.u32 %s137_s3, 4  ;;  %p831_p0 = pnand %p516_p13, %p798_p4  ;;  %s146_s4 = int_to_ptr.vmem [resolvable:$true] %s145_s4 }
  0x16   : > { %p490_p1 = scmp.ge.s32.totalorder %s734_s14, 1  ;;  %s134_s6 = scalar_lea.sflag [#allocation3], %s822_s25 }
  0x17   : > { %p596_p2 = pneg %p831_p0  ;;  %s607_s7 = scalar_lea.vmem %s146_s4, 512 }
  0x18   : > { %p608_p3 = scmp.ne.s32.totalorder %s146_s4, %s607_s7  ;;  %s736_s8 = smov [#allocation2]  }
  0x19   : > { %s612_s15 = sshll.u32 %s736_s8, 4  ;;  %s613_s15 = int_to_ptr.vmem [resolvable:$false] %s612_s15 }
  0x1a   : > { %p610_p5 = pnand %p608_p3, %p596_p2  ;;  %s614_s16 = scalar_lea.vmem %s613_s15, 1024 }
  0x1b   : > { %p615_p4 = scmp.lt.s32.totalorder %s146_s4, %s613_s15  ;;  %p616_p7 = scmp.lt.s32.totalorder %s614_s16, %s607_s7 }
  0x1c   : > { %p611_p6 = pneg %p610_p5 }
  0x1d   : > { %p617_p10 = por %p616_p7, %p615_p4 }
  0x1f   : > { %p618_p13 = pnand %p617_p10, %p611_p6 }
  0x21   : > { %621 = shalt.err (!%p618_p13)
}
  0x22   : > { %s737_s18 = smov 128   ;;  %s738_s19 = smov 8  }
  0x23   : > { %508 = dma.hbm_to_vmem [thread:$0]  (!%p831_p0), %s144_s30, 512, %s146_s4, %s134_s6, %s737_s18, %s737_s18, %s738_s19  }
  0x24   : > { %p172_p3 = scmp.lt.s32.totalorder %s734_s14, 3  ;;  %s488_s20 = sshll.u32 %s822_s25, 3 }
  0x25   : > { %s489_s26 = sshll.u32 %s730_s13, 7  ;;  %s159_s7 = scalar_lea.vmem [#allocation5], %s488_s20 }
  0x26   : > { %p849_p5 = pnand %p490_p1, %p172_p3  ;;  %s165_s3 = scalar_lea.hbm %s1040_s1, %s489_s26 }
  0x27   : > { %s167_s8 = sshll.u32 %s159_s7, 4  ;;  %s156_s15 = scalar_lea.sflag [#allocation6], %s822_s25  ;;  %s168_s8 = int_to_ptr.vmem [resolvable:$true] %s167_s8 }
  0x28   : > { %s635_s16 = scalar_lea.vmem %s168_s8, 128  ;;  %s739_s30 = smov [#allocation5]  }
  0x29   : > { %p636_p6 = scmp.ne.s32.totalorder %s168_s8, %s635_s16  ;;  %s640_s4 = sshll.u32 %s739_s30, 4  ;;  %s641_s4 = int_to_ptr.vmem [resolvable:$false] %s640_s4 }
  0x2a   : > { %s642_s6 = scalar_lea.vmem %s641_s4, 256  ;;  %p643_p1 = scmp.lt.s32.totalorder %s168_s8, %s641_s4 }
  0x2b   : > { %p638_p4 = pnand %p636_p6, %p596_p2  ;;  %p644_p10 = scmp.lt.s32.totalorder %s642_s6, %s635_s16 }
  0x2d   : > { %p639_p7 = pneg %p638_p4  ;;  %p645_p13 = por %p644_p10, %p643_p1 }
  0x2f   : > { %p646_p3 = pnand %p645_p13, %p639_p7 }
  0x31   : > { %649 = shalt.err (!%p646_p3)
}
  0x32   : > { %511 = dma.hbm_to_vmem [thread:$0]  (!%p831_p0), %s165_s3, 128, %s168_s8, %s156_s15  }
  0x33   : > { %176 = sbr.rel (%p849_p5) target bundleno = 134 (0x86), region = 28  ;;  %s865_s25 = sand.u32 (!%p849_p5), 1, %s718_s10  }
  0x34   : > { %s491_s18 = sshll.u32 (!%p849_p5), %s865_s25, 5  ;;  %s179_s19 = scalar_lea.sflag (!%p849_p5), [#allocation3], %s865_s25 }
  0x35   : > { %s182_s20 = scalar_lea.vmem (!%p849_p5), [#allocation2], %s491_s18 }
  0x38   : > { %701 = dma.done.wait (%p804_p8), %s179_s19, 512  }
  0x39   : > { %703 = vsyncadd (%p804_p8), %s179_s19, 4294966784  ;;  %s492_s5 = sshll.u32 %s865_s25, 3  ;;  %s188_s26 = scalar_lea.sflag [#allocation6], %s865_s25 }
  0x3a   : > { %s191_s27 = scalar_lea.vmem [#allocation5], %s492_s5 }
  0x3b   : > { %705 = dma.done.wait (%p804_p8), %s188_s26, 128  }
  0x3c   : > { %707 = vsyncadd (%p804_p8), %s188_s26, 4294967168  ;;  %v881_v0 = vld [vmem:[%s182_s20] sm:$0xff]  ;;  %v883_v1 = vld [vmem:[%s182_s20 + $0x8] sm:$0xff]  ;;  %v740_v63 = vmov 0.75   ;;  %s495_s21 = sshll.u32 %s726_s12, 7  ;;  %s216_s28 = scalar_lea.vmem [#allocation7], %s492_s5 }
  0x3d   : > { %v885_v2 = vld [vmem:[%s182_s20 + $0x10] sm:$0xff]  ;;  %v887_v3 = vld [vmem:[%s182_s20 + $0x18] sm:$0xff]  ;;  %v242_v4 = vand.u32 2147483647, %v881_v0  ;;  %v243_v5 = vand.u32 2147483647, %v883_v1  ;;  %s376_s8 = scalar_lea.hbm %s1041_s2, %s495_s21 }
  0x3e   : > { %v244_v6 = vand.u32 2147483647, %v885_v2  ;;  %v245_v7 = vand.u32 2147483647, %v887_v3  ;;  %v229_v22 = vld [vmem:[%s191_s27] sm:$0xff]  ;;  %v258_v33 = vmax.f32 %v881_v0, 0.0 }
  0x3f   : > { %v246_v8 = vsub.f32 0.0, %v242_v4  ;;  %v247_v9 = vsub.f32 0.0, %v243_v5  ;;  %v230_v25 = vunpack.c.0.s8 %v229_v22  ;;  %v231_v26 = vunpack.c.1.s8 %v229_v22  ;;  %s378_s29 = sshll.u32 %s216_s28, 4  ;;  %s365_s15 = scalar_lea.sflag [#allocation4], %s865_s25  ;;  %s379_s29 = int_to_ptr.vmem [resolvable:$true] %s378_s29 }
  0x40   : > { %v248_v10 = vsub.f32 0.0, %v244_v6  ;;  %v249_v11 = vsub.f32 0.0, %v245_v7  ;;  %v232_v27 = vunpack.c.2.s8 %v229_v22  ;;  %v233_v28 = vunpack.c.3.s8 %v229_v22  ;;  %s650_s16 = scalar_lea.vmem %s379_s29, 128  ;;  %s741_s30 = smov [#allocation7]  }
  0x41   : > { %v250_v12 = vmul.f32 1.442695, %v246_v8  ;;  %v252_v13 = vmul.f32 1.442695, %v247_v9  ;;  %v905_v29 = vcvt.s32.f32 %v230_v25  ;;  %v907_v30 = vcvt.s32.f32 %v231_v26  ;;  %p651_p8 = scmp.ne.s32.totalorder %s379_s29, %s650_s16  ;;  %s654_s4 = sshll.u32 %s741_s30, 4  ;;  %s655_s4 = int_to_ptr.vmem [resolvable:$false] %s654_s4 }
  0x42   : > { %v254_v14 = vmul.f32 1.442695, %v248_v10  ;;  %v256_v15 = vmul.f32 1.442695, %v249_v11  ;;  %v909_v31 = vcvt.s32.f32 %v232_v27  ;;  %v911_v32 = vcvt.s32.f32 %v233_v28  ;;  %s656_s12 = scalar_lea.vmem %s655_s4, 256  ;;  %p657_p5 = scmp.lt.s32.totalorder %s379_s29, %s655_s4 }
  0x43   : > { %570 = vpow2.f32 %v250_v12  ;;  %v259_v34 = vmax.f32 %v883_v1, 0.0  ;;  %v260_v35 = vmax.f32 %v885_v2, 0.0  ;;  %v262_v36 = vmul.f32 %v905_v29, %v881_v0  ;;  %p652_p0 = pnand %p651_p8, %p808_p9  ;;  %p658_p6 = scmp.lt.s32.totalorder %s656_s12, %s650_s16 }
  0x44   : > { %572 = vpow2.f32 %v252_v13  ;;  %v263_v37 = vmul.f32 %v907_v30, %v883_v1  ;;  %v261_v39 = vmax.f32 %v887_v3, 0.0  ;;  %v264_v40 = vmul.f32 %v909_v31, %v885_v2 }
  0x45   : > { %574 = vpow2.f32 %v254_v14  ;;  %v265_v41 = vmul.f32 %v911_v32, %v887_v3  ;;  %vm238_vm0 = vcmp.gt.f32.partialorder %v905_v29, 0.5  ;;  %vm239_vm1 = vcmp.gt.f32.partialorder %v907_v30, 0.5  ;;  %p653_p2 = pneg %p652_p0  ;;  %p659_p4 = por %p658_p6, %p657_p5 }
  0x46   : > { %576 = vpow2.f32 %v256_v15  ;;  %vm310_vm2 = vcmp.ge.f32.partialorder %v881_v0, 0.0  ;;  %vm311_vm3 = vcmp.ge.f32.partialorder %v883_v1, 0.0  ;;  %vm240_vm4 = vcmp.gt.f32.partialorder %v909_v31, 0.5 }
  0x47   : > { %v266_v47 = vsub.f32 %v258_v33, %v262_v36  ;;  %v267_v48 = vsub.f32 %v259_v34, %v263_v37  ;;  %vm241_vm5 = vcmp.gt.f32.partialorder %v911_v32, 0.5  ;;  %v268_v52 = vsub.f32 %v260_v35, %v264_v40  ;;  %p660_p7 = pnand %p659_p4, %p653_p2 }
  0x48   : > { %v269_v53 = vsub.f32 %v261_v39, %v265_v41  ;;  %vm312_vm6 = vcmp.ge.f32.partialorder %v885_v2, 0.0  ;;  %vm313_vm7 = vcmp.ge.f32.partialorder %v887_v3, 0.0  ;;  %v338_v4 = vsel %vm238_vm0, 0.25, %v740_v63 }
  0x49   : > { %v339_v33 = vsel %vm239_vm1, 0.25, %v740_v63  ;;  %v340_v30 = vsel %vm240_vm4, 0.25, %v740_v63 }
  0x50   : > { %v893_v16 = vpop.eup %570 }
  0x51   : > { %v895_v17 = vpop.eup %572  ;;  %v270_v19 = vadd.f32 1.0, %v893_v16  ;;  %v273_v38 = vmul.f32 -0.5, %v893_v16  ;;  %v276_v44 = vand.u32 2147483647, %v893_v16  ;;  %v314_v58 = vsel %vm310_vm2, 1.0, %v893_v16 }
  0x52   : > { %v897_v18 = vpop.eup %574  ;;  %v279_v21 = vadd.f32 1.0, %v895_v17  ;;  %v282_v42 = vmul.f32 -0.5, %v895_v17  ;;  %v285_v50 = vand.u32 2147483647, %v895_v17  ;;  %v315_v62 = vsel %vm311_vm3, 1.0, %v895_v17 }
  0x53   : > { %v900_v20 = vpop.eup %576  ;;  %578 = vlog2.f32 %v270_v19  ;;  %v288_v23 = vadd.f32 1.0, %v897_v18  ;;  %v291_v43 = vmul.f32 -0.5, %v897_v18  ;;  %v274_v49 = vadd.f32 1.0, %v273_v38 }
  0x54   : > { %580 = vlog2.f32 %v279_v21  ;;  %v297_v24 = vadd.f32 1.0, %v900_v20  ;;  %v300_v45 = vmul.f32 -0.5, %v900_v20  ;;  %v283_v54 = vadd.f32 1.0, %v282_v42 }
  0x55   : > { %582 = vlog2.f32 %v288_v23  ;;  %v292_v56 = vadd.f32 1.0, %v291_v43  ;;  %v294_v57 = vand.u32 2147483647, %v897_v18  ;;  %vm943_vm8 = vcmp.lt.f32.partialorder %v276_v44, 0.0004427343 }
  0x56   : > { %584 = vlog2.f32 %v297_v24  ;;  %v301_v61 = vadd.f32 1.0, %v300_v45  ;;  %v275_v7 = vmul.f32 %v893_v16, %v274_v49  ;;  %vm953_vm9 = vcmp.lt.f32.partialorder %v285_v50, 0.0004427343 }
  0x57   : > { %586 = vrcp.f32 %v270_v19  ;;  %v316_v8 = vsel %vm312_vm6, 1.0, %v897_v18  ;;  %v284_v1 = vmul.f32 %v895_v17, %v283_v54  ;;  %v303_v10 = vand.u32 2147483647, %v900_v20 }
  0x58   : > { %588 = vrcp.f32 %v279_v21  ;;  %v317_v11 = vsel %vm313_vm7, 1.0, %v900_v20  ;;  %v293_v15 = vmul.f32 %v897_v18, %v292_v56  ;;  %vm966_vm10 = vcmp.lt.f32.partialorder %v294_v57, 0.0004427343 }
  0x59   : > { %590 = vrcp.f32 %v288_v23  ;;  %v302_v17 = vmul.f32 %v900_v20, %v301_v61  ;;  %vm973_vm11 = vcmp.lt.f32.partialorder %v303_v10, 0.0004427343  ;;  %v341_v49 = vsel %vm241_vm5, 0.25, %v740_v63 }
  0x5a   : > { %592 = vrcp.f32 %v297_v24 }
  0x60   : > { %v579_v46 = vpop.eup %578 }
  0x61   : > { %v581_v51 = vpop.eup %580  ;;  %v272_v6 = vmul.f32 0.6931472, %v579_v46 }
  0x62   : > { %v583_v55 = vpop.eup %582  ;;  %v281_v14 = vmul.f32 0.6931472, %v581_v51 }
  0x63   : > { %v585_v59 = vpop.eup %584  ;;  %v290_v21 = vmul.f32 0.6931472, %v583_v55  ;;  %v278_v3 = vsel %vm943_vm8, %v275_v7, %v272_v6 }
  0x64   : > { %v587_v5 = vpop.eup %586  ;;  %v299_v24 = vmul.f32 0.6931472, %v585_v59  ;;  %v287_v20 = vsel %vm953_vm9, %v284_v1, %v281_v14  ;;  %v306_v38 = vadd.f32 %v278_v3, %v266_v47 }
  0x65   : > { %v589_v9 = vpop.eup %588  ;;  %v323_v12 = vmul.f32 %v587_v5, %v314_v58  ;;  %v296_v37 = vsel %vm966_vm10, %v293_v15, %v290_v21  ;;  %v307_v44 = vadd.f32 %v287_v20, %v267_v48 }
  0x66   : > { %v591_v13 = vpop.eup %590  ;;  %v325_v2 = vmul.f32 %v589_v9, %v315_v62  ;;  %v305_v40 = vsel %vm973_vm11, %v302_v17, %v299_v24  ;;  %v308_v47 = vadd.f32 %v296_v37, %v268_v52 }
  0x67   : > { %v593_v19 = vpop.eup %592  ;;  %v327_v22 = vmul.f32 %v591_v13, %v316_v8  ;;  %v330_v23 = vsub.f32 1.0, %v323_v12  ;;  %v309_v54 = vadd.f32 %v305_v40, %v269_v53 }
  0x68   : > { %v329_v25 = vmul.f32 %v593_v19, %v317_v11  ;;  %v331_v26 = vsub.f32 1.0, %v325_v2 }
  0x69   : > { %v332_v18 = vsub.f32 1.0, %v327_v22  ;;  %v334_v28 = vsel %vm238_vm0, %v323_v12, %v330_v23 }
  0x6a   : > { %v333_v34 = vsub.f32 1.0, %v329_v25  ;;  %v335_v35 = vsel %vm239_vm1, %v325_v2, %v331_v26  ;;  %v342_v36 = vsub.f32 1.0, %v334_v28 }
  0x6b   : > { %v336_v39 = vsel %vm240_vm4, %v327_v22, %v332_v18  ;;  %v343_v29 = vsub.f32 1.0, %v335_v35 }
  0x6c   : > { %v337_v41 = vsel %vm241_vm5, %v329_v25, %v333_v34  ;;  %v344_v42 = vsub.f32 1.0, %v336_v39  ;;  %v346_v43 = vmul.f32 %v342_v36, %v342_v36 }
  0x6d   : > { %v345_v45 = vsub.f32 1.0, %v337_v41  ;;  %v347_v46 = vmul.f32 %v343_v29, %v343_v29 }
  0x6e   : > { %v348_v50 = vmul.f32 %v344_v42, %v344_v42  ;;  %v350_v51 = vmul.f32 %v346_v43, %v338_v4 }
  0x6f   : > { %v349_v55 = vmul.f32 %v345_v45, %v345_v45  ;;  %v351_v56 = vmul.f32 %v347_v46, %v339_v33 }
  0x70   : > { %v352_v57 = vmul.f32 %v348_v50, %v340_v30  ;;  %v354_v58 = vmul.f32 %v350_v51, %v306_v38 }
  0x71   : > { %v353_v48 = vmul.f32 %v349_v55, %v341_v49  ;;  %v355_v31 = vmul.f32 %v351_v56, %v307_v44 }
  0x72   : > { %v356_v59 = vmul.f32 %v352_v57, %v308_v47 }
  0x73   : > { %v357_v60 = vmul.f32 %v353_v48, %v309_v54 }
  0x74   : > { %v358_v61 = vadd.f32 %v356_v59, %v354_v58 }
  0x75   : > { %v359_v62 = vadd.f32 %v357_v60, %v355_v31 }
  0x77   : > { %v360_v32 = vadd.f32 %v359_v62, %v358_v61 }
  0x79   : > { %363 = vst [vmem:[%s216_s28] sm:$0xff] %v360_v32 }
  0x7a   : > { %663 = shalt.err (!%p660_p7)
}
  0x7b   : > { %s664_s6 = scalar_lea.hbm %s376_s8, 128  ;;  %s668_s19 = scalar_lea.hbm %s1041_s2, 256 }
  0x7c   : > { %p665_p1 = scmp.ne.s32.totalorder %s376_s8, %s664_s6  ;;  %p669_p3 = scmp.lt.s32.totalorder %s376_s8, %s1041_s2 }
  0x7d   : > { %p670_p8 = scmp.lt.s32.totalorder %s668_s19, %s664_s6 }
  0x7e   : > { %p666_p10 = pnand %p665_p1, %p808_p9 }
  0x7f   : > { %p671_p0 = por %p670_p8, %p669_p3 }
  0x80   : > { %p667_p13 = pneg %p666_p10 }
  0x82   : > { %p672_p12 = pnand %p671_p0, %p667_p13 }
  0x84   : > { %675 = shalt.err (!%p672_p12)
}
  0x85   : > { %503 = dma.vmem_to_hbm [thread:$0]  (%p808_p9), %s379_s29, 128, %s376_s8, %s365_s15  }
  0x86 PF: > { %s390_s26 = sand.u32 1, %s714_s9   ;;  %p1056_p2 = scmp.ge.s32.totalorder %s734_s14, 2 }
  0x87   : > { %s391_s27 = scalar_lea.sflag [#allocation4], %s390_s26 }
  0x88   : > { %p513_p5 = pnand %p1056_p2, %p815_p11 }
  0x8a   : > { %p514_p6 = pneg %p513_p5 }
  0x8c   : > { %709 = dma.done.wait (%p514_p6), %s391_s27, 128  }
  0x8d   : > { %711 = vsyncadd (%p514_p6), %s391_s27, 4294967168  ;;  %s21_s14 = sadd.s32 1, %s734_s14   ;;  %s1057_s9 = smov %s718_s10 }
  0x8e   : > { %p18_p4 = scmp.ge.s32.totalorder %s21_s14, 4   ;;  %s1058_s10 = smov %s722_s11 }
  0x8f   : > { %s1059_s11 = smov %s813_s23  ;;  %s1060_s12 = smov %s730_s13 }
  0x90   : > { %s1061_s13 = smov %s1063_s17  ;;  %20 = sbr.rel (!%p18_p4) target bundleno = 8 (0x8), region = 90 }
  0x95   :  { %396 = vsyncpa [#allocation3], 1 }
  0x96   :  { %398 = vsyncpa [#allocation3 + $0x1], 1 }
  0x97   :  { %399 = vsyncpa [#allocation6], 1 }
  0x98   :  { %401 = vsyncpa [#allocation6 + $0x1], 1 }
  0x99   :  { %402 = vsyncpa [#allocation4], 1 }
  0x9a   :  { %404 = vsyncpa [#allocation4 + $0x1], 1 }

</bundles_post_ra>
